<compile_context>
chip_gen: v7x
topology: tpu7x:2x2x1
jax: 0.10.0
libtpu: 0.0.40
codegen_flags: <defaults>
</compile_context>

<pallas_src>
from typing import NamedTuple, Optional

import jax
import jax.numpy as jnp
from jax import lax
from jax.experimental import pallas as pl
from jax.experimental.pallas import tpu as pltpu


def _round_up(x, m):
    return ((x + m - 1) // m) * m


def _pad2(a, rows, cols):
    pr, pc = rows - a.shape[0], cols - a.shape[1]
    if pr or pc:
        a = jnp.pad(a, ((0, pr), (0, pc)))
    return a


# ----------------------------------------------------------------------------
# Kernel: one (i, j, k) grid step of  Y = X S.T + XR L.T + b.
# Grid: (M/bm, N/bn, K/bk), K innermost ("arbitrary").
#   x_ref  : (bm, bk)     bf16  activation tile            index (i, k)
#   st_ref : (bk, bn)     bf16  sparse weight (in,out)     index (k, j)
#   xr_ref : (bm, r_pad)  bf16  precomputed X @ R.T tile   index (i, 0)
#   lt_ref : (r_pad, bn)  bf16  left weight (rank,out)     index (0, j)
#   b_ref  : (1, bn)      f32   bias tile                  index (0, j)
#   o_ref  : (bm, bn)           output tile                index (i, j)
#   acc_ref: (bm, bn)     f32   accumulator (scratch, init'ed with bias)
# ----------------------------------------------------------------------------
def _losparse_kernel(x_ref, st_ref, xr_ref, lt_ref, b_ref, o_ref, acc_ref):
    k = pl.program_id(2)

    @pl.when(k == 0)
    def _init():
        # Bias folded into the accumulator init (broadcast over the bm rows).
        acc_ref[...] = jnp.broadcast_to(b_ref[...], acc_ref.shape)

    # Sparse path partial:  X_tile @ S^T_tile  (standard NN matmul on the MXU,
    # f32 accumulation; S was transposed once at weight-prep time).
    acc_ref[...] += jnp.dot(x_ref[...], st_ref[...],
                            preferred_element_type=jnp.float32)

    # Finalize once per (i, j): low-rank stage 2 (XR @ L.T), then store.
    @pl.when(k == pl.num_programs(2) - 1)
    def _finalize():
        lrx = jnp.dot(xr_ref[...], lt_ref[...],
                      preferred_element_type=jnp.float32)
        o_ref[...] = (acc_ref[...] + lrx).astype(o_ref.dtype)


# ----------------------------------------------------------------------------
# One-time weight preparation (do this at parameter-load time and reuse).
# ----------------------------------------------------------------------------
class LoSparseWeights(NamedTuple):
    st: jax.Array        # (k_p, n_p)   bf16   sparse.weight.T, padded
    lt: jax.Array        # (r_pad, n_p) bf16   left.weight.T, padded
    right: jax.Array     # (rank, in)   bf16   right.weight (for wrapper XR GEMM)
    bias: jax.Array      # (1, n_p)     f32
    in_feature: int
    out_feature: int
    rank: int
    r_pad: int
    n_p: int
    k_p: int
    block_n: int
    block_k: int


def prepare_losparse_weights(left_w, right_w, sparse_w, bias=None, *,
                             block_n=512, block_k=1024,
                             weight_dtype=jnp.bfloat16) -> LoSparseWeights:
    """Cast/transpose/pad the static weights ONCE (hoisted out of the hot path)."""
    out_f, rank = left_w.shape
    in_f = right_w.shape[1]
    assert sparse_w.shape == (out_f, in_f)

    r_pad = _round_up(max(rank, 1), 128)           # pad tiny rank to a lane width
    bn = min(block_n, _round_up(out_f, 128))
    bk = min(block_k, _round_up(in_f, 128))
    n_p = _round_up(out_f, bn)
    k_p = _round_up(in_f, bk)

    wdt = weight_dtype
    st = _pad2(jnp.transpose(sparse_w).astype(wdt), k_p, n_p)   # (in, out)
    lt = _pad2(jnp.transpose(left_w).astype(wdt), r_pad, n_p)   # (rank, out)
    right = right_w.astype(wdt)                                 # (rank, in)
    b = bias if bias is not None else jnp.zeros((out_f,), jnp.float32)
    bp = _pad2(b.astype(jnp.float32).reshape(1, out_f), 1, n_p)

    return LoSparseWeights(st, lt, right, bp, in_f, out_f, rank, r_pad,
                           n_p, k_p, bn, bk)


# ----------------------------------------------------------------------------
# Per-call forward with pre-prepared weights.
# ----------------------------------------------------------------------------
def losparse_linear_apply(w: LoSparseWeights, x, *,
                          block_m=1024,
                          out_dtype=jnp.float32,
                          vmem_limit_bytes=48 * 1024 * 1024):
    in_f, out_f = w.in_feature, w.out_feature
    lead = x.shape[:-1]
    x2 = x.reshape(-1, in_f)                 # collapse leading dims -> tokens
    m = x2.shape[0]
    wdt = w.st.dtype

    bm = min(block_m, _round_up(m, 8))
    m_p = _round_up(m, bm)
    bn, bk = w.block_n, w.block_k
    r_pad = w.r_pad

    x2w = x2.astype(wdt)
    # Low-rank stage 1 hoisted to the wrapper (tiny skinny GEMM m x in x rank),
    # computed once per call instead of once per N tile inside the kernel.
    nt = (((1,), (1,)), ((), ()))            # (m,in) x (rank,in) -> (m,rank)
    xr = lax.dot_general(x2w, w.right, nt, preferred_element_type=jnp.float32)
    xrp = _pad2(xr.astype(wdt), m_p, r_pad)
    xp = _pad2(x2w, m_p, w.k_p)

    grid = (m_p // bm, w.n_p // bn, w.k_p // bk)

    out = pl.pallas_call(
        _losparse_kernel,
        out_shape=jax.ShapeDtypeStruct((m_p, w.n_p), out_dtype),
        grid_spec=pltpu.PrefetchScalarGridSpec(
            num_scalar_prefetch=0,
            grid=grid,
            in_specs=[
                pl.BlockSpec((bm, bk), lambda i, j, k: (i, k)),       # X
                pl.BlockSpec((bk, bn), lambda i, j, k: (k, j)),       # S.T
                pl.BlockSpec((bm, r_pad), lambda i, j, k: (i, 0)),    # XR
                pl.BlockSpec((r_pad, bn), lambda i, j, k: (0, j)),    # L.T
                pl.BlockSpec((1, bn), lambda i, j, k: (0, j)),        # bias
            ],
            out_specs=pl.BlockSpec((bm, bn), lambda i, j, k: (i, j)),
            scratch_shapes=[pltpu.VMEM((bm, bn), jnp.float32)],       # accumulator
        ),
        compiler_params=pltpu.CompilerParams(
            dimension_semantics=("parallel", "parallel", "arbitrary"),
            vmem_limit_bytes=vmem_limit_bytes),
    )(xp, w.st, xrp, w.lt, w.bias)

    return out[:m, :out_f].reshape(*lead, out_f)


# Convenience one-shot wrapper (prep + apply).  For repeated calls, call
# prepare_losparse_weights() once and reuse it with losparse_linear_apply().
def losparse_linear(x, left_w, right_w, sparse_w, bias=None, *,
                    block_m=1024, block_n=512, block_k=1024,
                    weight_dtype=jnp.bfloat16, out_dtype=jnp.float32):
    w = prepare_losparse_weights(left_w, right_w, sparse_w, bias,
                                 block_n=block_n, block_k=block_k,
                                 weight_dtype=weight_dtype)
    return losparse_linear_apply(w, x, block_m=block_m, out_dtype=out_dtype)


# ----------------------------------------------------------------------------
# Pure-JAX reference mimicking the kernel's numerics (bf16 in, f32 acc).
# ----------------------------------------------------------------------------
def _reference(x, left_w, right_w, sparse_w, bias, wdt=jnp.bfloat16):
    in_f = x.shape[-1]
    out_f = left_w.shape[0]
    lead = x.shape[:-1]
    nt = (((1,), (1,)), ((), ()))
    xt = x.reshape(-1, in_f).astype(wdt)
    xr = lax.dot_general(xt, right_w.astype(wdt), nt,
                         preferred_element_type=jnp.float32)
    lrx = lax.dot_general(xr.astype(wdt), left_w.astype(wdt), nt,
                          preferred_element_type=jnp.float32)
    sx = lax.dot_general(xt, sparse_w.astype(wdt), nt,
                         preferred_element_type=jnp.float32)
    y = lrx + sx + (bias if bias is not None else 0.0)
    return y.reshape(*lead, out_f)


if __name__ == "__main__":
    key = jax.random.PRNGKey(0)

    # --- Test 1: (batch, seq, in) input, small blocks to exercise a multi-tile grid.
    in_feature, out_feature, reduced_rank = 256, 256, 4
    batch, seq = 2, 8
    k_x, k_l, k_r, k_s, k_b = jax.random.split(key, 5)
    x = jax.random.normal(k_x, (batch, seq, in_feature), dtype=jnp.float32)
    left_w = jax.random.normal(k_l, (out_feature, reduced_rank), jnp.float32) * 0.1
    right_w = jax.random.normal(k_r, (reduced_rank, in_feature), jnp.float32) * 0.1
    sparse_w = jax.random.normal(k_s, (out_feature, in_feature), jnp.float32) * 0.1
    bias = jax.random.normal(k_b, (out_feature,), jnp.float32) * 0.1

    y = losparse_linear(x, left_w, right_w, sparse_w, bias,
                        block_m=8, block_n=128, block_k=128)
    y = jax.block_until_ready(y)
    assert y.shape == (batch, seq, out_feature)

    y_ref = _reference(x, left_w, right_w, sparse_w, bias)
    assert jnp.allclose(y, y_ref, atol=2e-3, rtol=2e-3), "mismatch vs bf16 reference (test 1)"
    y_f32 = (x.reshape(-1, in_feature) @ right_w.T) @ left_w.T \
        + x.reshape(-1, in_feature) @ sparse_w.T + bias
    assert jnp.allclose(y.reshape(-1, out_feature), y_f32, atol=1e-1, rtol=1e-1), \
        "gross mismatch vs f32 reference (test 1)"

    # --- Test 2: docstring shapes (2, 16) -> (2, 32), no bias, default blocks;
    #             exercises M/N/K padding and the single-tile grid.
    in2, out2, r2 = 16, 32, 2
    k_x2, k_l2, k_r2, k_s2, _ = jax.random.split(jax.random.PRNGKey(1), 5)
    x2 = jax.random.normal(k_x2, (2, in2), jnp.float32)
    lw2 = jax.random.normal(k_l2, (out2, r2), jnp.float32) * 0.1
    rw2 = jax.random.normal(k_r2, (r2, in2), jnp.float32) * 0.1
    sw2 = jax.random.normal(k_s2, (out2, in2), jnp.float32) * 0.1

    y2 = jax.block_until_ready(losparse_linear(x2, lw2, rw2, sw2, None))
    assert y2.shape == (2, out2)
    y2_ref = _reference(x2, lw2, rw2, sw2, None)
    assert jnp.allclose(y2, y2_ref, atol=2e-3, rtol=2e-3), "mismatch vs bf16 reference (test 2)"

    # --- Test 3: prepare weights once, reuse across two calls (decode + prefill
    #             shaped inputs) -- the intended hot-path usage.
    wprep = prepare_losparse_weights(left_w, right_w, sparse_w, bias)
    x_dec = x[:, :1, :]                               # (2, 1, in)  "decode"
    y_dec = jax.block_until_ready(losparse_linear_apply(wprep, x_dec))
    y_pre = jax.block_until_ready(losparse_linear_apply(wprep, x))   # "prefill"
    assert jnp.allclose(y_dec, _reference(x_dec, left_w, right_w, sparse_w, bias),
                        atol=2e-3, rtol=2e-3), "mismatch vs bf16 reference (test 3a)"
    assert jnp.allclose(y_pre, y_ref, atol=2e-3, rtol=2e-3), "mismatch vs bf16 reference (test 3b)"

    print("KERNEL_OK")
</pallas_src>

<mosaic_0001>
module attributes {stable_mosaic.version = 11 : i64} {
  func.func @_losparse_kernel(%arg0: i32, %arg1: i32, %arg2: i32, %arg3: memref<8x128xbf16, #tpu.memory_space<vmem>>, %arg4: memref<128x128xbf16, #tpu.memory_space<vmem>>, %arg5: memref<8x128xbf16, #tpu.memory_space<vmem>>, %arg6: memref<128x128xbf16, #tpu.memory_space<vmem>>, %arg7: memref<1x128xf32, #tpu.memory_space<vmem>>, %arg8: memref<8x128xf32, #tpu.memory_space<vmem>>, %arg9: memref<8x128xf32, #tpu.memory_space<vmem>>) attributes {dimension_semantics = [#tpu.dimension_semantics<parallel>, #tpu.dimension_semantics<parallel>, #tpu.dimension_semantics<arbitrary>], iteration_bounds = array<i64: 2, 2, 2>, scalar_prefetch = 0 : i64, scratch_operands = 1 : i64, tpu.core_type = #tpu.core_type<tc>, window_params = [{transform_indices = @transform_0, window_bounds = array<i64: 8, 128>}, {transform_indices = @transform_1, window_bounds = array<i64: 128, 128>}, {transform_indices = @transform_2, window_bounds = array<i64: 8, 128>}, {transform_indices = @transform_3, window_bounds = array<i64: 128, 128>}, {transform_indices = @transform_4, window_bounds = array<i64: 1, 128>}, {transform_indices = @transform_5, window_bounds = array<i64: 8, 128>}]} {
    %c0_i32 = arith.constant 0 : i32
    %0 = arith.cmpi eq, %arg2, %c0_i32 : i32
    %1 = arith.extui %0 : i1 to i32
    %c0_i32_0 = arith.constant 0 : i32
    %2 = arith.cmpi ne, %1, %c0_i32_0 : i32
    scf.if %2 {
      %c0_9 = arith.constant 0 : index
      %c0_10 = arith.constant 0 : index
      %12 = vector.load %arg7[%c0_9, %c0_10] : memref<1x128xf32, #tpu.memory_space<vmem>>, vector<1x128xf32>
      %13 = vector.shape_cast %12 : vector<1x128xf32> to vector<1x128xf32>
      %14 = vector.broadcast %13 : vector<1x128xf32> to vector<8x128xf32>
      %c0_11 = arith.constant 0 : index
      %c0_12 = arith.constant 0 : index
      %15 = vector.load %arg9[%c0_11, %c0_12] : memref<8x128xf32, #tpu.memory_space<vmem>>, vector<8x128xf32>
      tpu.vector_store %arg9[%c0_11, %c0_12], %14 {strides = array<i32>} : memref<8x128xf32, #tpu.memory_space<vmem>>, vector<8x128xf32>,
    } else {
    }
    %c0 = arith.constant 0 : index
    %c0_1 = arith.constant 0 : index
    %3 = vector.load %arg9[%c0, %c0_1] : memref<8x128xf32, #tpu.memory_space<vmem>>, vector<8x128xf32>
    %c0_2 = arith.constant 0 : index
    %c0_3 = arith.constant 0 : index
    %4 = vector.load %arg3[%c0_2, %c0_3] : memref<8x128xbf16, #tpu.memory_space<vmem>>, vector<8x128xbf16>
    %c0_4 = arith.constant 0 : index
    %c0_5 = arith.constant 0 : index
    %5 = vector.load %arg4[%c0_4, %c0_5] : memref<128x128xbf16, #tpu.memory_space<vmem>>, vector<128x128xbf16>
    %cst = arith.constant dense<0.000000e+00> : vector<8x128xf32>
    %6 = tpu.matmul %4, %5, %cst {dimension_numbers = #tpu.dot_dimension_numbers<[1], [0], [0], [1], [0, 0, 1, 1], [], []>} : vector<8x128xbf16>, vector<128x128xbf16>, vector<8x128xf32> -> vector<8x128xf32>
    %7 = arith.addf %3, %6 : vector<8x128xf32>
    %c0_6 = arith.constant 0 : index
    %c0_7 = arith.constant 0 : index
    %8 = vector.load %arg9[%c0_6, %c0_7] : memref<8x128xf32, #tpu.memory_space<vmem>>, vector<8x128xf32>
    tpu.vector_store %arg9[%c0_6, %c0_7], %7 {strides = array<i32>} : memref<8x128xf32, #tpu.memory_space<vmem>>, vector<8x128xf32>,
    %c1_i32 = arith.constant 1 : i32
    %9 = arith.cmpi eq, %arg2, %c1_i32 : i32
    %10 = arith.extui %9 : i1 to i32
    %c0_i32_8 = arith.constant 0 : i32
    %11 = arith.cmpi ne, %10, %c0_i32_8 : i32
    scf.if %11 {
      %c0_9 = arith.constant 0 : index
      %c0_10 = arith.constant 0 : index
      %12 = vector.load %arg5[%c0_9, %c0_10] : memref<8x128xbf16, #tpu.memory_space<vmem>>, vector<8x128xbf16>
      %c0_11 = arith.constant 0 : index
      %c0_12 = arith.constant 0 : index
      %13 = vector.load %arg6[%c0_11, %c0_12] : memref<128x128xbf16, #tpu.memory_space<vmem>>, vector<128x128xbf16>
      %cst_13 = arith.constant dense<0.000000e+00> : vector<8x128xf32>
      %14 = tpu.matmul %12, %13, %cst_13 {dimension_numbers = #tpu.dot_dimension_numbers<[1], [0], [0], [1], [0, 0, 1, 1], [], []>} : vector<8x128xbf16>, vector<128x128xbf16>, vector<8x128xf32> -> vector<8x128xf32>
      %c0_14 = arith.constant 0 : index
      %c0_15 = arith.constant 0 : index
      %15 = vector.load %arg9[%c0_14, %c0_15] : memref<8x128xf32, #tpu.memory_space<vmem>>, vector<8x128xf32>
      %16 = arith.addf %15, %14 : vector<8x128xf32>
      %c0_16 = arith.constant 0 : index
      %c0_17 = arith.constant 0 : index
      %17 = vector.load %arg8[%c0_16, %c0_17] : memref<8x128xf32, #tpu.memory_space<vmem>>, vector<8x128xf32>
      tpu.vector_store %arg8[%c0_16, %c0_17], %16 {strides = array<i32>} : memref<8x128xf32, #tpu.memory_space<vmem>>, vector<8x128xf32>,
    } else {
    }
    return
  }
  func.func @transform_0(%arg0: i32, %arg1: i32, %arg2: i32) -> (i32, i32) {
    %c0_i32 = arith.constant 0 : i32
    return %arg0, %arg2 : i32, i32
  }
  func.func @transform_1(%arg0: i32, %arg1: i32, %arg2: i32) -> (i32, i32) {
    %c0_i32 = arith.constant 0 : i32
    return %arg2, %arg1 : i32, i32
  }
  func.func @transform_2(%arg0: i32, %arg1: i32, %arg2: i32) -> (i32, i32) {
    %c0_i32 = arith.constant 0 : i32
    %c0_i32_0 = arith.constant 0 : i32
    return %arg0, %c0_i32 : i32, i32
  }
  func.func @transform_3(%arg0: i32, %arg1: i32, %arg2: i32) -> (i32, i32) {
    %c0_i32 = arith.constant 0 : i32
    %c0_i32_0 = arith.constant 0 : i32
    return %c0_i32, %arg1 : i32, i32
  }
  func.func @transform_4(%arg0: i32, %arg1: i32, %arg2: i32) -> (i32, i32) {
    %c0_i32 = arith.constant 0 : i32
    %c0_i32_0 = arith.constant 0 : i32
    return %c0_i32, %arg1 : i32, i32
  }
  func.func @transform_5(%arg0: i32, %arg1: i32, %arg2: i32) -> (i32, i32) {
    %c0_i32 = arith.constant 0 : i32
    return %arg0, %arg1 : i32, i32
  }
}

</mosaic_0001>

<bundles_post_ra>
// kernel: tpu_custom_call.1
= control target key start
LH: loop header
LB: loop body
LE: loop exit
PB: predicated region body
PF: predicated region fallthrough
CT: control target
= control target key end

     0   :  { %s2121_s0 = inlined_call_operand.hbm [shape: bf16[16,256], index: 0, kind: input, shape index: {}]   ;;  %s2122_s1 = inlined_call_operand.hbm [shape: bf16[256,256], index: 1, kind: input, shape index: {}]   ;;  %s2123_s2 = inlined_call_operand.hbm [shape: bf16[16,128], index: 2, kind: input, shape index: {}]   ;;  %s2124_s3 = inlined_call_operand.hbm [shape: bf16[128,256], index: 3, kind: input, shape index: {}]   ;;  %s2125_s4 = inlined_call_operand.vmem [shape: f32[1,256], index: 4, kind: input, shape index: {}]   ;;  %s2126_s5 = inlined_call_operand.hbm [shape: f32[16,256], index: 5, kind: output, shape index: {}]  }
   0x1   :  { %2154 = sst [smem:[#allocation35_spill]] %s2121_s0 }
   0x2   :  { %2155 = sst [smem:[#allocation36_spill]] %s2122_s1 }
   0x3   :  { %2156 = sst [smem:[#allocation37_spill]] %s2123_s2 }
   0x4   :  { %2157 = sst [smem:[#allocation38_spill]] %s2124_s3 }
   0x5   :  { %2158 = sst [smem:[#allocation39_spill]] %s2125_s4 }
   0x6   :  { %2159 = sst [smem:[#allocation40_spill]] %s2126_s5 }
   0x7   :  { %10 = vsyncpa [#allocation4], 0 }
   0x8   :  { %12 = vsyncpa [#allocation4 + $0x1], 0 }
   0x9   :  { %13 = vsyncpa [#allocation7], 0 }
   0xa   :  { %15 = vsyncpa [#allocation7 + $0x1], 0 }
   0xb   :  { %16 = vsyncpa [#allocation10], 0 }
   0xc   :  { %18 = vsyncpa [#allocation10 + $0x1], 0 }
   0xd   :  { %19 = vsyncpa [#allocation5], 0 }
   0xe   :  { %21 = vsyncpa [#allocation5 + $0x1], 0  ;;  %s1532_s18 = smov 0   ;;  %s1534_s19 = smov 0  }
   0xf   :  { %s1536_s20 = smov 0   ;;  %s1538_s21 = smov 0  }
  0x10   :  { %s1540_s22 = smov 0   ;;  %s1542_s23 = smov 0  }
  0x11   :  { %s1544_s24 = smov 0   ;;  %s1546_s25 = smov 0  }
  0x12   :  { %s1548_s26 = smov 0   ;;  %s1550_s27 = smov 0  }
  0x13   :  { %s1552_s28 = smov 0   ;;  %s1554_s29 = smov 0  }
  0x14   :  { %s1556_s30 = smov 0   ;;  %s1558_s6 = smov 0  }
  0x15   :  { %s1560_s7 = smov 0   ;;  %s1562_s8 = smov 0  }
  0x16   :  { %s1564_s9 = smov 0   ;;  %s1566_s10 = smov 0  }
  0x17   :  { %s1568_s11 = smov 0   ;;  %s1570_s12 = smov 0  }
  0x18   :  { %s1572_s13 = smov 0   ;;  %s1574_s14 = smov 0  }
  0x19 LB: > { %2160 = sst [smem:[#allocation17_spill]] %s1416_s21  ;;  %p2148_p0 = scmp.eq.s32.totalorder %s1488_s14, 0  ;;  %s1488_s14 = sphi %s1574_s14, %s27_s14   ;;  %s1484_s13 = sphi %s1572_s13, %s2260_s13   ;;  %s1480_s12 = sphi %s1570_s12, %s2259_s12   ;;  %s1476_s11 = sphi %s1568_s11, %s2258_s11   ;;  %s1472_s10 = sphi %s1566_s10, %s2257_s10   ;;  %s1468_s9 = sphi %s1564_s9, %s2256_s9   ;;  %s1464_s8 = sphi %s1562_s8, %s2255_s8   ;;  %s1460_s7 = sphi %s1560_s7, %s2242_s7   ;;  %s1456_s6 = sphi %s1558_s6, %s2254_s6   ;;  %s1452_s30 = sphi %s1556_s30, %s2240_s30   ;;  %s1448_s29 = sphi %s1554_s29, %s2239_s29   ;;  %s1444_s28 = sphi %s1552_s28, %s2238_s28   ;;  %s1440_s27 = sphi %s1550_s27, %s2237_s27   ;;  %s1436_s26 = sphi %s1548_s26, %s2253_s26   ;;  %s1432_s25 = sphi %s1546_s25, %s2252_s25   ;;  %s1428_s24 = sphi %s1544_s24, %s2250_s24   ;;  %s1424_s23 = sphi %s1542_s23, %s1890_s23   ;;  %s1420_s22 = sphi %s1540_s22, %s2235_s22   ;;  %s1416_s21 = sphi %s1538_s21, %s2247_s21   ;;  %s1412_s20 = sphi %s1536_s20, %s2245_s20   ;;  %s1408_s19 = sphi %s1534_s19, %s2244_s19   ;;  %s1404_s18 = sphi %s1532_s18, %s2243_s18  }
  0x1a   : > { %2161 = sst [smem:[#allocation18_spill]] %s1420_s22  ;;  %p90_p1 = scmp.ne.s32.totalorder %s1448_s29, %s1444_s28 }
  0x1b   : > { %2162 = sst [smem:[#allocation19_spill]] %s1424_s23  ;;  %p2132_p4 = scmp.lt.s32.totalorder %s1488_s14, 8 }
  0x1c   : > { %2163 = sst [smem:[#allocation20_spill]] %s1444_s28  ;;  %p92_p3 = por %p90_p1, %p2148_p0 }
  0x1d   : > { %2164 = sst [smem:[#allocation21_spill]] %s1448_s29  ;;  %s246_s17 = sand.u32 1, %s1488_s14  }
  0x1e   : > { %2165 = sst [smem:[#allocation22_spill]] %s1456_s6  ;;  %s248_s5 = sand.u32 1, %s1448_s29  }
  0x1f   : > { %2166 = sst [smem:[#allocation23_spill]] %s1460_s7  ;;  %s2170_s1 = sld [smem:[#allocation36_spill]] }
  0x20   : > { %2167 = sst [smem:[#allocation24_spill]] %s1464_s8  ;;  %s859_s8 = sshll.u32 %s1476_s11, 5 }
  0x21   : > { %2168 = sst [smem:[#allocation25_spill]] %s1468_s9  ;;  %s256_s4 = sadd.s32 %s1480_s12, %s859_s8 }
  0x22   : > { %2169 = sst [smem:[#allocation26_spill]] %s1472_s10  ;;  %s821_s10 = sshll.u32 %s248_s5, 6 }
  0x23   : > { %s250_s9 = scalar_lea.vmem [#allocation6], %s821_s10  ;;  %s824_s21 = sshll.u32 %s256_s4, 6 }
  0x24   : > { %s259_s3 = sshll.u32 %s250_s9, 4  ;;  %p1665_p5 = pnand %p2132_p4, %p92_p3  ;;  %s1656_s3 = int_to_ptr.vmem [resolvable:$true] %s259_s3 }
  0x25   : > { %s1661_s23 = scalar_lea.hbm %s2170_s1, %s824_s21  ;;  %s1669_s5 = scalar_lea.sflag [#allocation7], %s246_s17 }
  0x26   : > { %s1146_s4 = scalar_lea.hbm %s1661_s23, 1024  ;;  %p1148_p7 = pneg %p1665_p5 }
  0x27   : > { %p1147_p6 = scmp.ne.s32.totalorder %s1661_s23, %s1146_s4  ;;  %s1151_s8 = scalar_lea.hbm %s2170_s1, 4096 }
  0x28   : > { %p1152_p10 = scmp.lt.u32.totalorder %s1661_s23, %s2170_s1  ;;  %p1153_p11 = scmp.lt.u32.totalorder %s1151_s8, %s1146_s4 }
  0x29   : > { %p1149_p8 = pnand %p1148_p7, %p1147_p6  ;;  %p1155_p13 = scmp.lt.u32.totalorder %s1146_s4, %s1661_s23 }
  0x2a   : > { %p1154_p12 = por %p1153_p11, %p1152_p10 }
  0x2b   : > { %p1150_p9 = pneg %p1149_p8 }
  0x2c   : > { %p1156_p1 = por %p1155_p13, %p1154_p12 }
  0x2e   : > { %p1157_p3 = pnand %p1156_p1, %p1150_p9 }
  0x30   : > { %1160 = shalt.err (!%p1157_p3)
}
  0x31   : > { %s1161_s15 = scalar_lea.vmem %s1656_s3, 1024  ;;  %s1490_s17 = smov [#allocation6]  }
  0x32   : > { %p1162_p6 = scmp.ne.s32.totalorder %s1656_s3, %s1161_s15  ;;  %s1166_s21 = sshll.u32 %s1490_s17, 4  ;;  %s1167_s21 = int_to_ptr.vmem [resolvable:$false] %s1166_s21 }
  0x33   : > { %s1168_s22 = scalar_lea.vmem %s1167_s21, 2048  ;;  %p1169_p2 = scmp.lt.s32.totalorder %s1656_s3, %s1167_s21 }
  0x34   : > { %p1164_p8 = pnand %p1162_p6, %p1148_p7  ;;  %p1170_p10 = scmp.lt.s32.totalorder %s1168_s22, %s1161_s15 }
  0x36   : > { %p1165_p4 = pneg %p1164_p8  ;;  %p1171_p11 = por %p1170_p10, %p1169_p2 }
  0x38   : > { %p1172_p12 = pnand %p1171_p11, %p1165_p4 }
  0x3a   : > { %1175 = shalt.err (!%p1172_p12)
}
  0x3b   : > { %s2133_s4 = smov 128   ;;  %s2134_s8 = smov 64  }
  0x3c   : > { %s2135_s9 = smov 4   ;;  %p829_p2 = scmp.ge.s32.totalorder %s1488_s14, 1 }
  0x3d   : > { %934 = dma.hbm_to_vmem [thread:$0]  (!%p1665_p5), %s1661_s23, 1024, %s1656_s3, %s1669_s5, %s2133_s4, %s2134_s8, %s2135_s9  }
  0x3e   : > { %p311_p4 = scmp.lt.s32.totalorder %s1488_s14, 9  ;;  %s1707_s15 = sadd.s32 4294967295, %s1488_s14  }
  0x3f   : > { %s39_s16 = sadd.s32 1, %s1476_s11  ;;  %s46_s21 = sadd.s32 1, %s1484_s13 }
  0x40   : > { %p1702_p7 = pnand %p829_p2, %p311_p4  ;;  %p40_p9 = scmp.ge.s32.totalorder %s39_s16, 2 }
  0x41   : > { %s55_s3 = sadd.s32 1, %s1460_s7  ;;  %p62_p5 = scmp.ne.s32.totalorder %s1460_s7, %s1456_s6 }
  0x42   : > { %s2172_s10 = scalar_select %p1702_p7, 1, 0 }
  0x43   : > { %s2262_s16 = smov (%p40_p9, %s39_s16), 0  ;;  %s2174_s23 = sadd.s32 1, %s1480_s12 }
  0x44   : > { %2173 = sst [smem:[#allocation27_spill]] %s2262_s16  ;;  %s2264_s23 = smov (!%p40_p9, %s2174_s23), %s1480_s12 }
  0x45   : > { %s51_s22 = ssub.s32 %s1476_s11, %s2262_s16  ;;  %p1724_p13 = por %p2148_p0, %p62_p5 }
  0x46   : > { %p44_p1 = scmp.ge.s32.totalorder %s2264_s23, 2  ;;  %p68_p3 = scmp.ne.s32.totalorder %s1456_s6, %s1452_s30 }
  0x47   : > { %p2147_p6 = scmp.eq.s32.totalorder %s1707_s15, 0  ;;  %s189_s8 = sadd.s32 1, %s1412_s20 }
  0x48   : > { %s2266_s23 = smov (%p44_p1, %s2264_s23), 0  ;;  %s2268_s21 = smov (!%p44_p1, %s46_s21), %s1484_s13 }
  0x49   : > { %2176 = sst [smem:[#allocation28_spill]] %s2266_s23  ;;  %p1737_p8 = por %p2147_p6, %p68_p3 }
  0x4a   : > { %s1743_s17 = ssub.s32 %s1480_s12, %s2266_s23  ;;  %p48_p10 = scmp.ge.s32.totalorder %s2268_s21, 2 }
  0x4b   : > { %s2177_s9 = scalar_select %p1737_p8, 1, 0 }
  0x4c   : > { %s80_s30 = sor.u32 %s1743_s17, %s51_s22  ;;  %p2179_p12 = scmp.ne.s32.totalorder %s1444_s28, %s1440_s27 }
  0x4d   : > { %2178 = sst [smem:[#allocation29_spill]] %s2177_s9  ;;  %p81_p11 = scmp.eq.s32.totalorder %s80_s30, 0 }
  0x4e   : > { %p1751_p2 = por %p2179_p12, %p2147_p6  ;;  %s2270_s21 = smov (%p48_p10, %s2268_s21), 0 }
  0x4f   : > { %2182 = sst [smem:[#allocation31_spill]] %s2270_s21  ;;  %s2183_s23 = smov %s2270_s21 }
  0x50   : > { %s2180_s1 = scalar_select %p1751_p2, 1, 0 }
  0x51   : > { %s2184_s16 = sadd.s32 1, %s1448_s29  ;;  %s1764_s6 = ssub.s32 %s1484_s13, %s2183_s23 }
  0x52   : > { %2181 = sst [smem:[#allocation30_spill]] %s2180_s1  ;;  %s52_s30 = sor.u32 %s51_s22, %s1764_s6 }
  0x53   : > { %s1760_s9 = scalar_select %p81_p11, %s1448_s29, %s2184_s16  }
  0x54   : > { %s186_s27 = sor.u32 %s1743_s17, %s1764_s6  ;;  %p53_p9 = scmp.eq.s32.totalorder %s52_s30, 0 }
  0x55   : > { %2185 = sst [smem:[#allocation32_spill]] %s1760_s9  ;;  %p187_p5 = scmp.eq.s32.totalorder %s186_s27, 0 }
  0x56   : > { %p199_p1 = scmp.ne.s32.totalorder %s1412_s20, %s1408_s19  ;;  %p200_p3 = scmp.eq.s32.totalorder %s1707_s15, 7 }
  0x57   : > { %s1774_s21 = scalar_select %p53_p9, %s1460_s7, %s55_s3  }
  0x58   : > { %s1777_s1 = scalar_select %p187_p5, %s1412_s20, %s189_s8  }
  0x59   : > { %2186 = sst [smem:[#allocation33_spill]] %s1774_s21  ;;  %p1779_p10 = por %p200_p3, %p199_p1 }
  0x5a   : > { %2187 = sst [smem:[#allocation34_spill]] %s1777_s1  ;;  %p205_p11 = scmp.ne.s32.totalorder %s1408_s19, %s1404_s18 }
  0x5b   : > { %s2188_s16 = scalar_select %p1779_p10, 1, 0 }
  0x5c   : > { %s2189_s23 = sadd.s32 4294967294, %s1488_s14   ;;  %s226_s22 = sand.u32 1, %s1460_s7  }
  0x5d   : > { %p206_p12 = scmp.eq.s32.totalorder %s2189_s23, 7  ;;  %s818_s9 = sshll.u32 %s226_s22, 2 }
  0x5e   : > { %s819_s27 = sshll.u32 %s1484_s13, 1  ;;  %s230_s29 = scalar_lea.vmem [#allocation3], %s818_s9 }
  0x5f   : > { %p1788_p4 = por %p206_p12, %p205_p11  ;;  %s239_s28 = sshll.u32 %s230_s29, 4  ;;  %s1794_s28 = int_to_ptr.vmem [resolvable:$true] %s239_s28 }
  0x60   : > { %s235_s3 = sadd.s32 %s1476_s11, %s819_s27  ;;  %p2191_p9 = scmp.lt.s32.totalorder %s1488_s14, 8 }
  0x61   : > { %s2190_s30 = scalar_select %p1788_p4, 1, 0 }
  0x62   : > { %s820_s8 = sshll.u32 %s235_s3, 6  ;;  %p1800_p5 = pnand %p2191_p9, %p1724_p13 }
  0x63   : > { %s2193_s0 = sld [smem:[#allocation35_spill]]  ;;  %s227_s29 = scalar_lea.sflag [#allocation4], %s226_s22 }
  0x64   : > { %p1178_p3 = pneg %p1800_p5 }
  0x69   : > { %s1807_s1 = scalar_lea.hbm %s2193_s0, %s820_s8  ;;  %s1181_s7 = scalar_lea.hbm %s2193_s0, 256 }
  0x6a   : > { %s1176_s9 = scalar_lea.hbm %s1807_s1, 64  ;;  %p1182_p12 = scmp.lt.u32.totalorder %s1807_s1, %s2193_s0 }
  0x6b   : > { %p1177_p1 = scmp.ne.s32.totalorder %s1807_s1, %s1176_s9  ;;  %p1183_p9 = scmp.lt.u32.totalorder %s1181_s7, %s1176_s9 }
  0x6c   : > { %p1185_p0 = scmp.lt.u32.totalorder %s1176_s9, %s1807_s1 }
  0x6d   : > { %p1179_p13 = pnand %p1178_p3, %p1177_p1  ;;  %p1184_p6 = por %p1183_p9, %p1182_p12 }
  0x6f   : > { %p1180_p11 = pneg %p1179_p13  ;;  %p1186_p4 = por %p1185_p0, %p1184_p6 }
  0x71   : > { %p1187_p10 = pnand %p1186_p4, %p1180_p11 }
  0x73   : > { %1190 = shalt.err (!%p1187_p10)
}
  0x74   : > { %s1191_s22 = scalar_lea.vmem %s1794_s28, 64  ;;  %s1494_s23 = smov [#allocation3]  }
  0x75   : > { %p1192_p1 = scmp.ne.s32.totalorder %s1794_s28, %s1191_s22  ;;  %s1196_s4 = sshll.u32 %s1494_s23, 4  ;;  %s1197_s4 = int_to_ptr.vmem [resolvable:$false] %s1196_s4 }
  0x76   : > { %s1198_s27 = scalar_lea.vmem %s1197_s4, 128  ;;  %p1199_p8 = scmp.lt.s32.totalorder %s1794_s28, %s1197_s4 }
  0x77   : > { %p1194_p13 = pnand %p1192_p1, %p1178_p3  ;;  %p1200_p12 = scmp.lt.s32.totalorder %s1198_s27, %s1191_s22 }
  0x79   : > { %p1195_p2 = pneg %p1194_p13  ;;  %p1201_p9 = por %p1200_p12, %p1199_p8 }
  0x7b   : > { %p1202_p0 = pnand %p1201_p9, %p1195_p2 }
  0x7d   : > { %1205 = shalt.err (!%p1202_p0)
}
  0x7e   : > { %931 = dma.hbm_to_vmem [thread:$0]  (!%p1800_p5), %s1807_s1, 64, %s1794_s28, %s227_s29  }
  0x7f   : > { %p107_p6 = scmp.eq.s32.totalorder %s1764_s6, 0  ;;  %s109_s9 = sadd.s32 1, %s1436_s26 }
  0x80   : > { %p116_p8 = scmp.ne.s32.totalorder %s1436_s26, %s1432_s25  ;;  %p122_p2 = scmp.ne.s32.totalorder %s1432_s25, %s1428_s24 }
  0x81   : > { %s1841_s21 = scalar_select %p107_p6, %s1436_s26, %s109_s9  }
  0x82   : > { %p2194_p4 = scmp.eq.s32.totalorder %s1488_s14, 0  ;;  %p2195_p3 = scmp.eq.s32.totalorder %s1707_s15, 0 }
  0x83   : > { %s271_s3 = sand.u32 1, %s1436_s26   ;;  %s826_s8 = sshll.u32 %s1484_s13, 6 }
  0x84   : > { %p118_p10 = por %p116_p8, %p2194_p4  ;;  %p1847_p11 = por %p122_p2, %p2195_p3 }
  0x85   : > { %s825_s22 = sshll.u32 %s271_s3, 2  ;;  %s2197_s2 = sld [smem:[#allocation37_spill]] }
  0x86   : > { %s2196_s7 = scalar_select %p1847_p11, 1, 0 }
  0x87   : > { %p2198_p5 = scmp.lt.s32.totalorder %s1488_s14, 8  ;;  %s273_s28 = scalar_lea.vmem [#allocation8], %s825_s22 }
  0x88   : > { %s280_s6 = sshll.u32 %s273_s28, 4  ;;  %s281_s6 = int_to_ptr.vmem [resolvable:$true] %s280_s6 }
  0x89   : > { %p1860_p1 = pnand %p2198_p5, %p118_p10 }
  0x8b   : > { %s1856_s1 = scalar_lea.hbm %s2197_s2, %s826_s8  ;;  %p1208_p12 = pneg %p1860_p1 }
  0x8c   : > { %s1206_s29 = scalar_lea.hbm %s1856_s1, 64  ;;  %s1211_s3 = scalar_lea.hbm %s2197_s2, 128 }
  0x8d   : > { %p1207_p13 = scmp.ne.s32.totalorder %s1856_s1, %s1206_s29  ;;  %p1212_p6 = scmp.lt.u32.totalorder %s1856_s1, %s2197_s2 }
  0x8e   : > { %p1213_p8 = scmp.lt.u32.totalorder %s1211_s3, %s1206_s29  ;;  %p1215_p4 = scmp.lt.u32.totalorder %s1206_s29, %s1856_s1 }
  0x8f   : > { %p1209_p9 = pnand %p1208_p12, %p1207_p13 }
  0x90   : > { %p1214_p2 = por %p1213_p8, %p1212_p6 }
  0x91   : > { %p1210_p0 = pneg %p1209_p9 }
  0x92   : > { %p1216_p10 = por %p1215_p4, %p1214_p2 }
  0x94   : > { %p1217_p3 = pnand %p1216_p10, %p1210_p0 }
  0x96   : > { %1220 = shalt.err (!%p1217_p3)
}
  0x97   : > { %s1221_s22 = scalar_lea.vmem %s281_s6, 64  ;;  %s1495_s4 = smov [#allocation8]  }
  0x98   : > { %p1222_p5 = scmp.ne.s32.totalorder %s281_s6, %s1221_s22  ;;  %s1226_s28 = sshll.u32 %s1495_s4, 4  ;;  %s1227_s28 = int_to_ptr.vmem [resolvable:$false] %s1226_s28 }
  0x99   : > { %s1228_s27 = scalar_lea.vmem %s1227_s28, 128  ;;  %p1229_p11 = scmp.lt.s32.totalorder %s281_s6, %s1227_s28 }
  0x9a   : > { %p1224_p13 = pnand %p1222_p5, %p1208_p12  ;;  %p1230_p7 = scmp.lt.s32.totalorder %s1228_s27, %s1221_s22 }
  0x9c   : > { %p1225_p9 = pneg %p1224_p13  ;;  %p1231_p6 = por %p1230_p7, %p1229_p11 }
  0x9e   : > { %p1232_p8 = pnand %p1231_p6, %p1225_p9 }
  0xa0   : > { %1235 = shalt.err (!%p1232_p8)
}
  0xa1   : > { %s2200_s29 = sld [smem:[#allocation19_spill]]  ;;  %s2201_s9 = sld [smem:[#allocation18_spill]] }
  0xa2   : > { %s2202_s3 = sld [smem:[#allocation17_spill]]  ;;  %p2203_p7 = scmp.eq.s32.totalorder %s1743_s17, 0 }
  0xa3   : > { %937 = dma.hbm_to_vmem [thread:$0]  (!%p1860_p1), %s1856_s1, 64, %s281_s6, %s1669_s5  }
  0xa4   : > { %s828_s22 = sshll.u32 %s1480_s12, 6  ;;  %p2204_p0 = scmp.eq.s32.totalorder %s1488_s14, 0 }
  0xa5   : > { %p2205_p4 = scmp.eq.s32.totalorder %s1707_s15, 0  ;;  %s2207_s2 = sld [smem:[#allocation38_spill]] }
  0xa6   : > { %p2208_p1 = scmp.lt.s32.totalorder %s1488_s14, 8 }
  0xa7   : > { %s135_s8 = sadd.s32 1, %s2200_s29  ;;  %p142_p11 = scmp.ne.s32.totalorder %s2200_s29, %s2201_s9 }
  0xa8   : > { %s1890_s23 = scalar_select %p2203_p7, %s2200_s29, %s135_s8  }
  0xa9   : > { %p148_p12 = scmp.ne.s32.totalorder %s2201_s9, %s2202_s3  ;;  %s287_s24 = sand.u32 1, %s2200_s29  }
  0xaa   : > { %p144_p2 = por %p142_p11, %p2204_p0  ;;  %s827_s28 = sshll.u32 %s287_s24, 6 }
  0xab   : > { %p1902_p10 = por %p148_p12, %p2205_p4  ;;  %s1909_s5 = scalar_lea.hbm %s2207_s2, %s828_s22 }
  0xac   : > { %s291_s17 = scalar_lea.vmem [#allocation9], %s827_s28  ;;  %p1913_p3 = pnand %p2208_p1, %p144_p2 }
  0xad   : > { %s297_s1 = sshll.u32 %s291_s17, 4  ;;  %s1919_s29 = scalar_lea.sflag [#allocation10], %s287_s24  ;;  %s1917_s1 = int_to_ptr.vmem [resolvable:$true] %s297_s1 }
  0xae   : > { %s1236_s0 = scalar_lea.hbm %s1909_s5, 1024  ;;  %p1238_p13 = pneg %p1913_p3 }
  0xaf   : > { %p1237_p5 = scmp.ne.s32.totalorder %s1909_s5, %s1236_s0  ;;  %s1241_s8 = scalar_lea.hbm %s2207_s2, 2048 }
  0xb0   : > { %p1242_p8 = scmp.lt.u32.totalorder %s1909_s5, %s2207_s2  ;;  %p1243_p7 = scmp.lt.u32.totalorder %s1241_s8, %s1236_s0 }
  0xb1   : > { %p1239_p9 = pnand %p1238_p13, %p1237_p5  ;;  %p1245_p12 = scmp.lt.u32.totalorder %s1236_s0, %s1909_s5 }
  0xb2   : > { %p1244_p11 = por %p1243_p7, %p1242_p8 }
  0xb3   : > { %p1240_p6 = pneg %p1239_p9 }
  0xb4   : > { %p1246_p0 = por %p1245_p12, %p1244_p11 }
  0xb6   : > { %p1247_p2 = pnand %p1246_p0, %p1240_p6 }
  0xb8   : > { %1250 = shalt.err (!%p1247_p2)
}
  0xb9   : > { %s1251_s24 = scalar_lea.vmem %s1917_s1, 1024  ;;  %s1496_s27 = smov [#allocation9]  }
  0xba   : > { %p1252_p4 = scmp.ne.s32.totalorder %s1917_s1, %s1251_s24  ;;  %s1256_s17 = sshll.u32 %s1496_s27, 4  ;;  %s1257_s17 = int_to_ptr.vmem [resolvable:$false] %s1256_s17 }
  0xbb   : > { %s1258_s9 = scalar_lea.vmem %s1257_s17, 2048  ;;  %p1259_p9 = scmp.lt.s32.totalorder %s1917_s1, %s1257_s17 }
  0xbc   : > { %p1254_p1 = pnand %p1252_p4, %p1238_p13  ;;  %p1260_p8 = scmp.lt.s32.totalorder %s1258_s9, %s1251_s24 }
  0xbe   : > { %p1255_p5 = pneg %p1254_p1  ;;  %p1261_p7 = por %p1260_p8, %p1259_p9 }
  0xc0   : > { %p1262_p11 = pnand %p1261_p7, %p1255_p5 }
  0xc2   : > { %1265 = shalt.err (!%p1262_p11)
}
  0xc3   : > { %s2210_s0 = smov 4   ;;  %s2211_s3 = smov 64  }
  0xc4   : > { %s2212_s8 = smov 128   ;;  %p2213_p13 = scmp.ne.s32.totalorder %s2172_s10, 0 }
  0xc5   : > { %940 = dma.hbm_to_vmem [thread:$0]  (!%p1913_p3), %s1909_s5, 1024, %s1917_s1, %s1919_s29, %s2212_s8, %s2211_s3, %s2210_s0  }
  0xc6   : > { %315 = sbr.rel (%p2213_p13) target bundleno = 740 (0x2e4), region = 40  ;;  %s2214_s22 = sld [smem:[#allocation22_spill]] (!%p2213_p13) }
  0xc7   : > { %s2215_s28 = sld [smem:[#allocation29_spill]] (!%p2213_p13) }
  0xcc   : > { %s317_s27 = sand.u32 (!%p2213_p13), 1, %s2214_s22  }
  0xcd   : > { %s1953_s17 = sshll.u32 %s317_s27, 2  ;;  %s318_s24 = scalar_lea.sflag [#allocation4], %s317_s27 }
  0xce   : > { %s321_s9 = scalar_lea.vmem [#allocation3], %s1953_s17  ;;  %p2216_p6 = scmp.ne.s32.totalorder %s2215_s28, 0 }
  0xd0   : > { %1383 = dma.done.wait (%p2216_p6), %s318_s24, 64  }
  0xd1   : > { %1385 = vsyncadd (%p2216_p6), %s318_s24, 4294967232  ;;  %s2217_s6 = sld [smem:[#allocation20_spill]]  ;;  %s2218_s2 = sld [smem:[#allocation30_spill]] }
  0xd2   : > { %s326_s5 = sand.u32 1, %s1707_s15  }
  0xd3   : > { %s327_s29 = scalar_lea.sflag [#allocation7], %s326_s5 }
  0xd7   : > { %s328_s1 = sand.u32 1, %s2217_s6   ;;  %p2219_p3 = scmp.ne.s32.totalorder %s2218_s2, 0 }
  0xd8   : > { %s831_s10 = sshll.u32 %s328_s1, 6 }
  0xd9   : > { %s1962_s0 = scalar_lea.vmem [#allocation6], %s831_s10 }
  0xda   : > { %1387 = dma.done.wait (%p2219_p3), %s327_s29, 1024  }
  0xdb   : > { %1389 = vsyncadd (%p2219_p3), %s327_s29, 4294966272  ;;  %s337_s3 = sand.u32 1, %s1432_s25   ;;  %p2220_p12 = scmp.ne.s32.totalorder %s2196_s7, 0 }
  0xdc   : > { %s1969_s8 = sshll.u32 %s337_s3, 2 }
  0xdd   : > { %s339_s22 = scalar_lea.vmem [#allocation8], %s1969_s8 }
  0xde   : > { %1391 = dma.done.wait (%p2220_p12), %s327_s29, 64  }
  0xdf   : > { %1393 = vsyncadd (%p2220_p12), %s327_s29, 4294967232  ;;  %s2221_s15 = sld [smem:[#allocation18_spill]] }
  0xe5   : > { %s344_s28 = sand.u32 1, %s2221_s15  }
  0xe6   : > { %s833_s27 = sshll.u32 %s344_s28, 6  ;;  %s345_s24 = scalar_lea.sflag [#allocation10], %s344_s28 }
  0xe7   : > { %s1977_s6 = scalar_lea.vmem [#allocation9], %s833_s27 }
  0xe8   : > { %1395 = dma.done.wait (%p1902_p10), %s345_s24, 1024  }
  0xe9   : > { %1397 = vsyncadd (%p1902_p10), %s345_s24, 4294966272  ;;  %s2222_s2 = sld [smem:[#allocation25_spill]]  ;;  %s390_s5 = sand.u32 1, %s1408_s19  }
  0xea   : > { %s1987_s7 = sshll.u32 %s390_s5, 3  ;;  %s2223_s29 = sld [smem:[#allocation39_spill]] }
  0xeb   : > { %s392_s15 = scalar_lea.vmem [#allocation11], %s1987_s7  ;;  %s2224_s28 = sld [smem:[#allocation24_spill]] }
  0xef   : > { %p394_p0 = scmp.lt.s32.totalorder %s2222_s2, 1 }
  0xf1   : > { %s2272_s2 = smov (!%p394_p0, %s2222_s2), 1  ;;  %p835_p2 = scmp.ne.s32.totalorder %s2224_s28, 0 }
  0xf2   : > { %s396_s3 = scalar_lea.vmem %s2223_s29, %s2272_s2 }
  0xf3   : > { %401 = sbr.rel (%p835_p2) target bundleno = 250 (0xfa), region = 60  ;;  %v836_v0 = vld [vmem:[%s396_s3] ss:$0 sm:$0xff] (!%p835_p2) }
  0xf4   : > { %409 = vst [vmem:[#allocation2] sm:$0xff] (!%p835_p2), %v836_v0 }
  0xfa PF: > { %v1130_v1 = vld [vmem:[%s1962_s0] sm:$0xff]   ;;  %v1497_v2 = vmov 0.0   ;;  %v1131_v3 = vld [vmem:[%s1962_s0 + $0x8] sm:$0xff]   ;;  %vm1498_vm0 = vmmov 0   ;;  %v1132_v4 = vld [vmem:[%s1962_s0 + $0x10] sm:$0xff]   ;;  %s2225_s4 = sld [smem:[#allocation24_spill]] }
  0xfb   : > { %878 = vmatprep.subr.bf16.mxu0 %v1497_v2  ;;  %894 = vmatprep.mubr.msk.bf16.mxu0 %vm1498_vm0, %v1497_v2  ;;  %v1133_v5 = vld [vmem:[%s1962_s0 + $0x18] sm:$0xff]   ;;  %v1134_v6 = vld [vmem:[%s1962_s0 + $0x20] sm:$0xff]   ;;  %v1135_v7 = vld [vmem:[%s1962_s0 + $0x28] sm:$0xff]  }
  0xfc   : > { %879 = vmatpush3.bf16.msra.mxu0 %v1130_v1  ;;  %v1136_v8 = vld [vmem:[%s1962_s0 + $0x30] sm:$0xff]   ;;  %v1137_v9 = vld [vmem:[%s1962_s0 + $0x38] sm:$0xff]  }
  0xfd   : > { %880 = vmatprep.subr.bf16.mxu0 %v1497_v2  ;;  %v411_v10 = vld [vmem:[%s321_s9] sm:$0xf]  ;;  %v410_v11 = vld [vmem:[#allocation2] sm:$0xff] }
 0x100   : > { %881 = vmatpush3.bf16.msra.mxu0 %v1131_v3  ;;  %p845_p10 = scmp.ne.s32.totalorder %s2225_s4, 1 }
 0x101   : > { %882 = vmatprep.subr.bf16.mxu0 %v1497_v2  ;;  %v1138_v17 = vld [vmem:[%s1977_s6] sm:$0xff] (!%p845_p10)   ;;  %v1499_v18 = vmov (!%p845_p10), 0.0   ;;  %v1139_v19 = vld [vmem:[%s1977_s6 + $0x8] sm:$0xff] (!%p845_p10)   ;;  %vm1500_vm1 = vmmov (!%p845_p10), 0   ;;  %v1140_v20 = vld [vmem:[%s1977_s6 + $0x10] sm:$0xff] (!%p845_p10)  }
 0x102   : > { %v1141_v21 = vld [vmem:[%s1977_s6 + $0x18] sm:$0xff] (!%p845_p10)   ;;  %v1142_v22 = vld [vmem:[%s1977_s6 + $0x20] sm:$0xff] (!%p845_p10)   ;;  %v1143_v23 = vld [vmem:[%s1977_s6 + $0x28] sm:$0xff] (!%p845_p10)  }
 0x103   : > { %v1144_v24 = vld [vmem:[%s1977_s6 + $0x30] sm:$0xff] (!%p845_p10)   ;;  %v1145_v25 = vld [vmem:[%s1977_s6 + $0x38] sm:$0xff] (!%p845_p10)  }
 0x104   : > { %883 = vmatpush3.bf16.msra.mxu0 %v1132_v4  ;;  %v522_v26 = vld [vmem:[%s339_s22] sm:$0xf] (!%p845_p10) }
 0x105   : > { %884 = vmatprep.subr.bf16.mxu0 %v1497_v2 }
 0x108   : > { %885 = vmatpush3.bf16.msra.mxu0 %v1133_v5 }
 0x109   : > { %886 = vmatprep.subr.bf16.mxu0 %v1497_v2 }
 0x10c   : > { %887 = vmatpush3.bf16.msra.mxu0 %v1134_v6 }
 0x10d   : > { %888 = vmatprep.subr.bf16.mxu0 %v1497_v2 }
 0x110   : > { %889 = vmatpush3.bf16.msra.mxu0 %v1135_v7 }
 0x111   : > { %890 = vmatprep.subr.bf16.mxu0 %v1497_v2 }
 0x114   : > { %891 = vmatpush3.bf16.msra.mxu0 %v1136_v8 }
 0x115   : > { %892 = vmatprep.subr.bf16.mxu0 %v1497_v2 }
 0x118   : > { %893 = vmatpush3.bf16.msra.mxu0 %v1137_v9 }
 0x119   : > { %898 = vmatprep.subr.bf16.mxu0 (!%p845_p10), %v1499_v18 }
 0x11b   : > { %895 = vmatmul.mubr.bf16.vlgmr.msra.gmra.mrb[0].mxu0 %v411_v10 }
 0x11c   : > { %899 = vmatpush3.bf16.msra.mxu0 (!%p845_p10), %v1138_v17  ;;  %914 = vmatprep.mubr.msk.bf16.mxu0 (!%p845_p10), %vm1500_vm1, %v1499_v18 }
 0x11d   : > { %900 = vmatprep.subr.bf16.mxu0 (!%p845_p10), %v1499_v18 }
 0x120   : > { %901 = vmatpush3.bf16.msra.mxu0 (!%p845_p10), %v1139_v19 }
 0x121   : > { %902 = vmatprep.subr.bf16.mxu0 (!%p845_p10), %v1499_v18 }
 0x124   : > { %903 = vmatpush3.bf16.msra.mxu0 (!%p845_p10), %v1140_v20 }
 0x125   : > { %904 = vmatprep.subr.bf16.mxu0 (!%p845_p10), %v1499_v18 }
 0x128   : > { %905 = vmatpush3.bf16.msra.mxu0 (!%p845_p10), %v1141_v21 }
 0x129   : > { %906 = vmatprep.subr.bf16.mxu0 (!%p845_p10), %v1499_v18 }
 0x12c   : > { %907 = vmatpush3.bf16.msra.mxu0 (!%p845_p10), %v1142_v22 }
 0x12d   : > { %908 = vmatprep.subr.bf16.mxu0 (!%p845_p10), %v1499_v18 }
 0x130   : > { %909 = vmatpush3.bf16.msra.mxu0 (!%p845_p10), %v1143_v23 }
 0x131   : > { %910 = vmatprep.subr.bf16.mxu0 (!%p845_p10), %v1499_v18 }
 0x134   : > { %911 = vmatpush3.bf16.msra.mxu0 (!%p845_p10), %v1144_v24 }
 0x135   : > { %912 = vmatprep.subr.bf16.mxu0 (!%p845_p10), %v1499_v18 }
 0x138   : > { %913 = vmatpush3.bf16.msra.mxu0 (!%p845_p10), %v1145_v25 }
 0x1eb   : > { %521 = sbr.rel (%p845_p10) target bundleno = 712 (0x2c8), region = 64 }
 0x1ee   : > { %v510_v12 = vpop.f32.mrb[0].mxu0 }
 0x1ef   : > { %v516_v13 = vadd.f32 %v510_v12, %v410_v11  ;;  %v896_v14 = vpop.f32.mrb[1].mxu0 }
 0x1f0   : > { %v513_v15 = vpop.f32.mrb[2].mxu0 }
 0x1f1   : > { %517 = vst [vmem:[#allocation2] sm:$0xff] %v516_v13  ;;  %v897_v16 = vpop.f32.mrb[3].mxu0  ;;  %915 = vmatmul.mubr.bf16.vlgmr.msra.gmra.mrb[0].mxu0 (!%p845_p10), %v522_v26 }
 0x1f8   : > { %v627_v27 = vld [vmem:[#allocation2] sm:$0xff] }
 0x2c4   : > { %v621_v28 = vpop.f32.mrb[0].mxu0 }
 0x2c5   : > { %v628_v29 = vadd.f32 %v627_v27, %v621_v28  ;;  %v916_v30 = vpop.f32.mrb[1].mxu0 }
 0x2c6   : > { %v624_v31 = vpop.f32.mrb[2].mxu0 }
 0x2c7   : > { %629 = vst [vmem:[%s392_s15] sm:$0xff] %v628_v29  ;;  %v917_v32 = vpop.f32.mrb[3].mxu0 }
 0x2c8 PF: > { %s2226_s17 = sld [smem:[#allocation26_spill]]  ;;  %s2227_s9 = sld [smem:[#allocation25_spill]] }
 0x2c9   : > { %s646_s8 = sshll.u32 %s392_s15, 4  ;;  %s2228_s2 = sld [smem:[#allocation40_spill]]  ;;  %s2022_s8 = int_to_ptr.vmem [resolvable:$true] %s646_s8 }
 0x2ca   : > { %s631_s10 = scalar_lea.sflag [#allocation5], %s390_s5  ;;  %s1266_s29 = scalar_lea.vmem %s2022_s8, 128 }
 0x2cb   : > { %p1267_p4 = scmp.ne.s32.totalorder %s2022_s8, %s1266_s29  ;;  %p2229_p1 = scmp.ne.s32.totalorder %s2188_s16, 0 }
 0x2cc   : > { %s1501_s3 = smov [#allocation11]  }
 0x2cd   : > { %p1268_p5 = pnand %p1267_p4, %p2229_p1  ;;  %s1270_s7 = sshll.u32 %s1501_s3, 4  ;;  %s1271_s7 = int_to_ptr.vmem [resolvable:$false] %s1270_s7 }
 0x2ce   : > { %s855_s0 = sshll.u32 %s2226_s17, 1  ;;  %s1272_s15 = scalar_lea.vmem %s1271_s7, 256 }
 0x2cf   : > { %s642_s27 = sadd.s32 %s2227_s9, %s855_s0  ;;  %p1269_p9 = pneg %p1268_p5 }
 0x2d0   : > { %s856_s22 = sshll.u32 %s642_s27, 7  ;;  %p1273_p8 = scmp.lt.s32.totalorder %s2022_s8, %s1271_s7 }
 0x2d1   : > { %s644_s1 = scalar_lea.hbm %s2228_s2, %s856_s22  ;;  %p1274_p7 = scmp.lt.s32.totalorder %s1272_s15, %s1266_s29 }
 0x2d3   : > { %p1275_p11 = por %p1274_p7, %p1273_p8 }
 0x2d5   : > { %p1276_p13 = pnand %p1275_p11, %p1269_p9 }
 0x2d7   : > { %1279 = shalt.err (!%p1276_p13)
}
 0x2d8   : > { %s1280_s28 = scalar_lea.hbm %s644_s1, 128  ;;  %s1284_s17 = scalar_lea.hbm %s2228_s2, 512 }
 0x2d9   : > { %p1281_p6 = scmp.ne.s32.totalorder %s644_s1, %s1280_s28  ;;  %p1285_p0 = scmp.lt.u32.totalorder %s644_s1, %s2228_s2 }
 0x2da   : > { %p1286_p2 = scmp.lt.u32.totalorder %s1284_s17, %s1280_s28  ;;  %p1288_p4 = scmp.lt.u32.totalorder %s1280_s28, %s644_s1 }
 0x2db   : > { %p1282_p3 = pnand %p1281_p6, %p2229_p1 }
 0x2dc   : > { %p1287_p10 = por %p1286_p2, %p1285_p0 }
 0x2dd   : > { %p1283_p12 = pneg %p1282_p3 }
 0x2de   : > { %p1289_p5 = por %p1288_p4, %p1287_p10 }
 0x2e0   : > { %p1290_p9 = pnand %p1289_p5, %p1283_p12 }
 0x2e2   : > { %1293 = shalt.err (!%p1290_p9)
}
 0x2e3   : > { %926 = dma.vmem_to_hbm [thread:$0]  (%p2229_p1), %s2022_s8, 128, %s644_s1, %s631_s10  }
 0x2e4 PF: > { %p946_p8 = scmp.ge.s32.totalorder %s1488_s14, 2  ;;  %s658_s27 = sand.u32 1, %s1404_s18  }
 0x2e5   : > { %p2230_p7 = scmp.ne.s32.totalorder %s2190_s30, 0  ;;  %s659_s22 = scalar_lea.sflag [#allocation5], %s658_s27 }
 0x2e7   : > { %p942_p11 = pnand %p946_p8, %p2230_p7 }
 0x2e9   : > { %1399 = dma.done.wait (!%p942_p11), %s659_s22, 128  }
 0x2ea   : > { %1401 = vsyncadd (!%p942_p11), %s659_s22, 4294967168  ;;  %s27_s14 = sadd.s32 1, %s1488_s14   ;;  %s2233_s16 = sld [smem:[#allocation34_spill]] }
 0x2eb   : > { %p2050_p13 = scmp.ge.s32.totalorder %s27_s14, 10   ;;  %s2234_s8 = sld [smem:[#allocation18_spill]] }
 0x2ec   : > { %s2235_s22 = sld [smem:[#allocation19_spill]]  ;;  %s2236_s1 = smov %s1841_s21 }
 0x2ed   : > { %s2237_s27 = sld [smem:[#allocation20_spill]]  ;;  %s2238_s28 = sld [smem:[#allocation21_spill]] }
 0x2ee   : > { %s2239_s29 = sld [smem:[#allocation32_spill]]  ;;  %s2240_s30 = sld [smem:[#allocation22_spill]] }
 0x2ef   : > { %s2241_s10 = sld [smem:[#allocation23_spill]]  ;;  %s2242_s7 = sld [smem:[#allocation33_spill]] }
 0x2f0   : > { %s2243_s18 = smov %s1408_s19  ;;  %s2244_s19 = smov %s1412_s20 }
 0x2f1   : > { %s2245_s20 = smov %s2233_s16  ;;  %s2246_s3 = sld [smem:[#allocation27_spill]] }
 0x2f2   : > { %s2247_s21 = smov %s2234_s8  ;;  %s2248_s15 = sld [smem:[#allocation28_spill]] }
 0x2f3   : > { %s2249_s5 = sld [smem:[#allocation31_spill]]  ;;  %s2250_s24 = smov %s1432_s25 }
 0x2f4   : > { %s2252_s25 = smov %s1436_s26  ;;  %s2253_s26 = smov %s2236_s1 }
 0x2f5   : > { %s2254_s6 = smov %s2241_s10  ;;  %s2255_s8 = smov %s1476_s11 }
 0x2f6   : > { %s2256_s9 = smov %s1480_s12  ;;  %s2257_s10 = smov %s1484_s13 }
 0x2f7   : > { %s2258_s11 = smov %s2246_s3  ;;  %26 = sbr.rel (!%p2050_p13) target bundleno = 25 (0x19), region = 133 }
 0x2f8   : > { %s2259_s12 = smov %s2248_s15 }
 0x2f9   : > { %s2260_s13 = smov %s2249_s5 }
 0x2fe   :  { %664 = vsyncpa [#allocation4], 1 }
 0x2ff   :  { %666 = vsyncpa [#allocation4 + $0x1], 1 }
 0x300   :  { %667 = vsyncpa [#allocation7], 1 }
 0x301   :  { %669 = vsyncpa [#allocation7 + $0x1], 1 }
 0x302   :  { %670 = vsyncpa [#allocation10], 1 }
 0x303   :  { %672 = vsyncpa [#allocation10 + $0x1], 1 }
 0x304   :  { %673 = vsyncpa [#allocation5], 1 }
 0x305   :  { %675 = vsyncpa [#allocation5 + $0x1], 1 }

</bundles_post_ra>
